<compile_context>
chip_gen: v7x
topology: tpu7x:2x2x1
jax: 0.10.0
libtpu: 0.0.40
codegen_flags: <defaults>
</compile_context>

<pallas_src>
import jax
import jax.numpy as jnp
from jax.experimental import pallas as pl
from jax.experimental.pallas import tpu as pltpu

_IN, _HID, _OUT = 4, 8, 3    # nn.Linear(4, 8) -> nn.Linear(8, 3)
_LANES = 128


def iris_mlp_kernel(x_ref, w1_ref, b1_ref, w2_ref, b2_ref, o_ref):
    """One batch tile of G*128 examples.

    x_ref : (4, G, 128) VMEM — feature k slab x_ref[k] is (G, 128), full vregs.
    w1_ref: (8, 4)      SMEM — PyTorch (out_features, in_features) layout.
    b1_ref: (8,)        SMEM
    w2_ref: (3, 8)      SMEM
    b2_ref: (3,)        SMEM
    o_ref : (3, G, 128) VMEM — softmax probabilities, one class per slab.
    """
    g = x_ref.shape[1]
    f32 = jnp.float32

    # Load the 4 feature slabs once; each is a fully packed (G, 128) block.
    xk = [x_ref[k].astype(f32) for k in range(_IN)]

    # Logit accumulators, initialized with the fc2 bias.
    logits = [jnp.full((g, _LANES), b2_ref[i], dtype=f32) for i in range(_OUT)]

    # fc1 + ReLU + fc2, fully unrolled on the VPU.  Each hidden unit is 4
    # scalar*vector FMAs and is consumed immediately into the 3 logit slabs,
    # so only a handful of (G, 128) blocks are live at a time.
    for j in range(_HID):
        hj = jnp.full((g, _LANES), b1_ref[j], dtype=f32)
        for k in range(_IN):
            hj = hj + w1_ref[j, k] * xk[k]
        hj = jnp.maximum(hj, 0.0)                      # ReLU
        for i in range(_OUT):
            logits[i] = logits[i] + w2_ref[i, j] * hj

    # Numerically stable softmax over the 3 class slabs: 2 maxes + adds on the
    # VPU, exp + approximate reciprocal on the EUP — no XLU reduction needed.
    m = jnp.maximum(logits[0], jnp.maximum(logits[1], logits[2]))
    e = [jnp.exp(l - m) for l in logits]
    inv = pl.reciprocal(e[0] + e[1] + e[2], approx=True)
    for i in range(_OUT):
        o_ref[i, :, :] = (e[i] * inv).astype(o_ref.dtype)


def iris_classifier_forward(x, w1, b1, w2, b2, *, block_batch=2048,
                            io_dtype=jnp.float32):
    """x: (B, 4); w1: (8, 4); b1: (8,); w2: (3, 8); b2: (3,).

    Weights follow the PyTorch nn.Linear (out_features, in_features)
    convention and are used as-is (h = W1 @ x in the batch-on-lanes layout).
    Returns (B, 3) softmax probabilities in `io_dtype`.
    """
    B = x.shape[0]

    # Pick the batch tile so that the (8, 128) BlockSpec rule always holds:
    # either a single tile equal to the (128-padded) batch, or a tile whose
    # vreg-row count G = tb/128 is a multiple of 8.
    bp128 = pl.cdiv(B, _LANES) * _LANES
    if bp128 <= block_batch:
        tb = bp128                                     # single tile
    else:
        tb = max(1024, (block_batch // 1024) * 1024)   # G multiple of 8
    b_pad = pl.cdiv(B, tb) * tb
    g = tb // _LANES

    # Layout plumbing (wrapper-side only): batch -> lanes, zero-pad, then a
    # free contiguous reshape so the kernel sees fully packed (G, 128) slabs.
    xt = x.astype(io_dtype).T                          # (4, B)
    if b_pad != B:
        xt = jnp.pad(xt, ((0, 0), (0, b_pad - B)))
    xt = xt.reshape(_IN, b_pad // _LANES, _LANES)      # (4, B_pad/128, 128)

    # Weights/biases stay f32 scalars in SMEM regardless of io_dtype.
    w1 = w1.astype(jnp.float32)
    b1 = b1.astype(jnp.float32)
    w2 = w2.astype(jnp.float32)
    b2 = b2.astype(jnp.float32)

    out = pl.pallas_call(
        iris_mlp_kernel,
        out_shape=jax.ShapeDtypeStruct((_OUT, b_pad // _LANES, _LANES), io_dtype),
        grid=(b_pad // tb,),
        in_specs=[
            pl.BlockSpec((_IN, g, _LANES), lambda i: (0, i, 0)),  # x tile (VMEM)
            pl.BlockSpec(memory_space=pltpu.MemorySpace.SMEM),    # w1 (8, 4)
            pl.BlockSpec(memory_space=pltpu.MemorySpace.SMEM),    # b1 (8,)
            pl.BlockSpec(memory_space=pltpu.MemorySpace.SMEM),    # w2 (3, 8)
            pl.BlockSpec(memory_space=pltpu.MemorySpace.SMEM),    # b2 (3,)
        ],
        out_specs=pl.BlockSpec((_OUT, g, _LANES), lambda i: (0, i, 0)),
        compiler_params=pltpu.CompilerParams(
            # Batch tiles are independent -> shard across TensorCores.
            dimension_semantics=("parallel",),
        ),
    )(xt, w1, b1, w2, b2)

    # (3, B_pad/128, 128) -> (3, B_pad) -> (B, 3); padded columns sliced away.
    return out.reshape(_OUT, b_pad)[:, :B].T


def _reference_forward(x, w1, b1, w2, b2):
    h = jnp.maximum(x @ w1.T + b1, 0.0)
    logits = h @ w2.T + b2
    return jax.nn.softmax(logits, axis=1)


if __name__ == "__main__":
    key = jax.random.PRNGKey(0)
    kx, k1, k2, k3, k4 = jax.random.split(key, 5)

    B = 8  # small demo batch; the kernel is structured for the large-batch case
    x = jax.random.normal(kx, (B, 4), dtype=jnp.float32)

    # Deterministic parameters (shapes per nn.Linear(4,8) and nn.Linear(8,3)).
    w1 = jax.random.normal(k1, (8, 4), dtype=jnp.float32) * 0.5
    b1 = jax.random.normal(k2, (8,), dtype=jnp.float32) * 0.1
    w2 = jax.random.normal(k3, (3, 8), dtype=jnp.float32) * 0.5
    b2 = jax.random.normal(k4, (3,), dtype=jnp.float32) * 0.1

    ref = _reference_forward(x, w1, b1, w2, b2)

    # f32 I/O path (tolerance loosened slightly for pl.reciprocal(approx=True)).
    out = iris_classifier_forward(x, w1, b1, w2, b2)
    out = jax.block_until_ready(out)
    assert out.shape == (B, 3)
    assert jnp.allclose(out, ref, atol=5e-3, rtol=5e-3), "f32 mismatch vs reference"
    assert jnp.allclose(jnp.sum(out, axis=1), jnp.ones((B,)), atol=5e-3)

    # bf16 I/O path (halves HBM traffic for the large-batch case; compute
    # stays f32 in-kernel, so only a looser tolerance applies).
    out_bf16 = iris_classifier_forward(x, w1, b1, w2, b2, io_dtype=jnp.bfloat16)
    out_bf16 = jax.block_until_ready(out_bf16)
    assert out_bf16.shape == (B, 3)
    assert jnp.allclose(out_bf16.astype(jnp.float32), ref, atol=4e-2), \
        "bf16 mismatch vs reference"

    print("KERNEL_OK")
</pallas_src>

<mosaic_0001>
module attributes {stable_mosaic.version = 11 : i64} {
  func.func @iris_mlp_kernel(%arg0: i32, %arg1: memref<4x1x128xf32, #tpu.memory_space<vmem>>, %arg2: memref<8x4xf32, #tpu.memory_space<smem>>, %arg3: memref<8xf32, #tpu.memory_space<smem>>, %arg4: memref<3x8xf32, #tpu.memory_space<smem>>, %arg5: memref<3xf32, #tpu.memory_space<smem>>, %arg6: memref<3x1x128xf32, #tpu.memory_space<vmem>>) attributes {dimension_semantics = [#tpu.dimension_semantics<parallel>], iteration_bounds = array<i64: 1>, scalar_prefetch = 0 : i64, scratch_operands = 0 : i64, tpu.core_type = #tpu.core_type<tc>, window_params = [{transform_indices = @transform_0, window_bounds = array<i64: 4, 1, 128>}, {transform_indices = @transform_1, window_bounds = array<i64: 8, 4>}, {transform_indices = @transform_2, window_bounds = array<i64: 8>}, {transform_indices = @transform_3, window_bounds = array<i64: 3, 8>}, {transform_indices = @transform_4, window_bounds = array<i64: 3>}, {transform_indices = @transform_5, window_bounds = array<i64: 3, 1, 128>}]} {
    %c0 = arith.constant 0 : index
    %c0_0 = arith.constant 0 : index
    %c0_1 = arith.constant 0 : index
    %0 = vector.load %arg1[%c0, %c0_0, %c0_1] : memref<4x1x128xf32, #tpu.memory_space<vmem>>, vector<1x1x128xf32>
    %1 = vector.shape_cast %0 : vector<1x1x128xf32> to vector<1x128xf32>
    %c1 = arith.constant 1 : index
    %c0_2 = arith.constant 0 : index
    %c0_3 = arith.constant 0 : index
    %2 = vector.load %arg1[%c1, %c0_2, %c0_3] : memref<4x1x128xf32, #tpu.memory_space<vmem>>, vector<1x1x128xf32>
    %3 = vector.shape_cast %2 : vector<1x1x128xf32> to vector<1x128xf32>
    %c2 = arith.constant 2 : index
    %c0_4 = arith.constant 0 : index
    %c0_5 = arith.constant 0 : index
    %4 = vector.load %arg1[%c2, %c0_4, %c0_5] : memref<4x1x128xf32, #tpu.memory_space<vmem>>, vector<1x1x128xf32>
    %5 = vector.shape_cast %4 : vector<1x1x128xf32> to vector<1x128xf32>
    %c3 = arith.constant 3 : index
    %c0_6 = arith.constant 0 : index
    %c0_7 = arith.constant 0 : index
    %6 = vector.load %arg1[%c3, %c0_6, %c0_7] : memref<4x1x128xf32, #tpu.memory_space<vmem>>, vector<1x1x128xf32>
    %7 = vector.shape_cast %6 : vector<1x1x128xf32> to vector<1x128xf32>
    %c0_8 = arith.constant 0 : index
    %8 = memref.load %arg5[%c0_8] : memref<3xf32, #tpu.memory_space<smem>>
    %9 = vector.broadcast %8 : f32 to vector<1x128xf32>
    %c1_9 = arith.constant 1 : index
    %10 = memref.load %arg5[%c1_9] : memref<3xf32, #tpu.memory_space<smem>>
    %11 = vector.broadcast %10 : f32 to vector<1x128xf32>
    %c2_10 = arith.constant 2 : index
    %12 = memref.load %arg5[%c2_10] : memref<3xf32, #tpu.memory_space<smem>>
    %13 = vector.broadcast %12 : f32 to vector<1x128xf32>
    %c0_11 = arith.constant 0 : index
    %14 = memref.load %arg3[%c0_11] : memref<8xf32, #tpu.memory_space<smem>>
    %15 = vector.broadcast %14 : f32 to vector<1x128xf32>
    %c0_12 = arith.constant 0 : index
    %c0_13 = arith.constant 0 : index
    %16 = memref.load %arg2[%c0_12, %c0_13] : memref<8x4xf32, #tpu.memory_space<smem>>
    %17 = vector.broadcast %16 : f32 to vector<1x128xf32>
    %18 = arith.mulf %17, %1 : vector<1x128xf32>
    %19 = arith.addf %15, %18 : vector<1x128xf32>
    %c0_14 = arith.constant 0 : index
    %c1_15 = arith.constant 1 : index
    %20 = memref.load %arg2[%c0_14, %c1_15] : memref<8x4xf32, #tpu.memory_space<smem>>
    %21 = vector.broadcast %20 : f32 to vector<1x128xf32>
    %22 = arith.mulf %21, %3 : vector<1x128xf32>
    %23 = arith.addf %19, %22 : vector<1x128xf32>
    %c0_16 = arith.constant 0 : index
    %c2_17 = arith.constant 2 : index
    %24 = memref.load %arg2[%c0_16, %c2_17] : memref<8x4xf32, #tpu.memory_space<smem>>
    %25 = vector.broadcast %24 : f32 to vector<1x128xf32>
    %26 = arith.mulf %25, %5 : vector<1x128xf32>
    %27 = arith.addf %23, %26 : vector<1x128xf32>
    %c0_18 = arith.constant 0 : index
    %c3_19 = arith.constant 3 : index
    %28 = memref.load %arg2[%c0_18, %c3_19] : memref<8x4xf32, #tpu.memory_space<smem>>
    %29 = vector.broadcast %28 : f32 to vector<1x128xf32>
    %30 = arith.mulf %29, %7 : vector<1x128xf32>
    %31 = arith.addf %27, %30 : vector<1x128xf32>
    %cst = arith.constant 0.000000e+00 : f32
    %32 = vector.broadcast %cst : f32 to vector<1x128xf32>
    %33 = arith.maximumf %31, %32 : vector<1x128xf32>
    %c0_20 = arith.constant 0 : index
    %c0_21 = arith.constant 0 : index
    %34 = memref.load %arg4[%c0_20, %c0_21] : memref<3x8xf32, #tpu.memory_space<smem>>
    %35 = vector.broadcast %34 : f32 to vector<1x128xf32>
    %36 = arith.mulf %35, %33 : vector<1x128xf32>
    %37 = arith.addf %9, %36 : vector<1x128xf32>
    %c1_22 = arith.constant 1 : index
    %c0_23 = arith.constant 0 : index
    %38 = memref.load %arg4[%c1_22, %c0_23] : memref<3x8xf32, #tpu.memory_space<smem>>
    %39 = vector.broadcast %38 : f32 to vector<1x128xf32>
    %40 = arith.mulf %39, %33 : vector<1x128xf32>
    %41 = arith.addf %11, %40 : vector<1x128xf32>
    %c2_24 = arith.constant 2 : index
    %c0_25 = arith.constant 0 : index
    %42 = memref.load %arg4[%c2_24, %c0_25] : memref<3x8xf32, #tpu.memory_space<smem>>
    %43 = vector.broadcast %42 : f32 to vector<1x128xf32>
    %44 = arith.mulf %43, %33 : vector<1x128xf32>
    %45 = arith.addf %13, %44 : vector<1x128xf32>
    %c1_26 = arith.constant 1 : index
    %46 = memref.load %arg3[%c1_26] : memref<8xf32, #tpu.memory_space<smem>>
    %47 = vector.broadcast %46 : f32 to vector<1x128xf32>
    %c1_27 = arith.constant 1 : index
    %c0_28 = arith.constant 0 : index
    %48 = memref.load %arg2[%c1_27, %c0_28] : memref<8x4xf32, #tpu.memory_space<smem>>
    %49 = vector.broadcast %48 : f32 to vector<1x128xf32>
    %50 = arith.mulf %49, %1 : vector<1x128xf32>
    %51 = arith.addf %47, %50 : vector<1x128xf32>
    %c1_29 = arith.constant 1 : index
    %c1_30 = arith.constant 1 : index
    %52 = memref.load %arg2[%c1_29, %c1_30] : memref<8x4xf32, #tpu.memory_space<smem>>
    %53 = vector.broadcast %52 : f32 to vector<1x128xf32>
    %54 = arith.mulf %53, %3 : vector<1x128xf32>
    %55 = arith.addf %51, %54 : vector<1x128xf32>
    %c1_31 = arith.constant 1 : index
    %c2_32 = arith.constant 2 : index
    %56 = memref.load %arg2[%c1_31, %c2_32] : memref<8x4xf32, #tpu.memory_space<smem>>
    %57 = vector.broadcast %56 : f32 to vector<1x128xf32>
    %58 = arith.mulf %57, %5 : vector<1x128xf32>
    %59 = arith.addf %55, %58 : vector<1x128xf32>
    %c1_33 = arith.constant 1 : index
    %c3_34 = arith.constant 3 : index
    %60 = memref.load %arg2[%c1_33, %c3_34] : memref<8x4xf32, #tpu.memory_space<smem>>
    %61 = vector.broadcast %60 : f32 to vector<1x128xf32>
    %62 = arith.mulf %61, %7 : vector<1x128xf32>
    %63 = arith.addf %59, %62 : vector<1x128xf32>
    %cst_35 = arith.constant 0.000000e+00 : f32
    %64 = vector.broadcast %cst_35 : f32 to vector<1x128xf32>
    %65 = arith.maximumf %63, %64 : vector<1x128xf32>
    %c0_36 = arith.constant 0 : index
    %c1_37 = arith.constant 1 : index
    %66 = memref.load %arg4[%c0_36, %c1_37] : memref<3x8xf32, #tpu.memory_space<smem>>
    %67 = vector.broadcast %66 : f32 to vector<1x128xf32>
    %68 = arith.mulf %67, %65 : vector<1x128xf32>
    %69 = arith.addf %37, %68 : vector<1x128xf32>
    %c1_38 = arith.constant 1 : index
    %c1_39 = arith.constant 1 : index
    %70 = memref.load %arg4[%c1_38, %c1_39] : memref<3x8xf32, #tpu.memory_space<smem>>
    %71 = vector.broadcast %70 : f32 to vector<1x128xf32>
    %72 = arith.mulf %71, %65 : vector<1x128xf32>
    %73 = arith.addf %41, %72 : vector<1x128xf32>
    %c2_40 = arith.constant 2 : index
    %c1_41 = arith.constant 1 : index
    %74 = memref.load %arg4[%c2_40, %c1_41] : memref<3x8xf32, #tpu.memory_space<smem>>
    %75 = vector.broadcast %74 : f32 to vector<1x128xf32>
    %76 = arith.mulf %75, %65 : vector<1x128xf32>
    %77 = arith.addf %45, %76 : vector<1x128xf32>
    %c2_42 = arith.constant 2 : index
    %78 = memref.load %arg3[%c2_42] : memref<8xf32, #tpu.memory_space<smem>>
    %79 = vector.broadcast %78 : f32 to vector<1x128xf32>
    %c2_43 = arith.constant 2 : index
    %c0_44 = arith.constant 0 : index
    %80 = memref.load %arg2[%c2_43, %c0_44] : memref<8x4xf32, #tpu.memory_space<smem>>
    %81 = vector.broadcast %80 : f32 to vector<1x128xf32>
    %82 = arith.mulf %81, %1 : vector<1x128xf32>
    %83 = arith.addf %79, %82 : vector<1x128xf32>
    %c2_45 = arith.constant 2 : index
    %c1_46 = arith.constant 1 : index
    %84 = memref.load %arg2[%c2_45, %c1_46] : memref<8x4xf32, #tpu.memory_space<smem>>
    %85 = vector.broadcast %84 : f32 to vector<1x128xf32>
    %86 = arith.mulf %85, %3 : vector<1x128xf32>
    %87 = arith.addf %83, %86 : vector<1x128xf32>
    %c2_47 = arith.constant 2 : index
    %c2_48 = arith.constant 2 : index
    %88 = memref.load %arg2[%c2_47, %c2_48] : memref<8x4xf32, #tpu.memory_space<smem>>
    %89 = vector.broadcast %88 : f32 to vector<1x128xf32>
    %90 = arith.mulf %89, %5 : vector<1x128xf32>
    %91 = arith.addf %87, %90 : vector<1x128xf32>
    %c2_49 = arith.constant 2 : index
    %c3_50 = arith.constant 3 : index
    %92 = memref.load %arg2[%c2_49, %c3_50] : memref<8x4xf32, #tpu.memory_space<smem>>
    %93 = vector.broadcast %92 : f32 to vector<1x128xf32>
    %94 = arith.mulf %93, %7 : vector<1x128xf32>
    %95 = arith.addf %91, %94 : vector<1x128xf32>
    %cst_51 = arith.constant 0.000000e+00 : f32
    %96 = vector.broadcast %cst_51 : f32 to vector<1x128xf32>
    %97 = arith.maximumf %95, %96 : vector<1x128xf32>
    %c0_52 = arith.constant 0 : index
    %c2_53 = arith.constant 2 : index
    %98 = memref.load %arg4[%c0_52, %c2_53] : memref<3x8xf32, #tpu.memory_space<smem>>
    %99 = vector.broadcast %98 : f32 to vector<1x128xf32>
    %100 = arith.mulf %99, %97 : vector<1x128xf32>
    %101 = arith.addf %69, %100 : vector<1x128xf32>
    %c1_54 = arith.constant 1 : index
    %c2_55 = arith.constant 2 : index
    %102 = memref.load %arg4[%c1_54, %c2_55] : memref<3x8xf32, #tpu.memory_space<smem>>
    %103 = vector.broadcast %102 : f32 to vector<1x128xf32>
    %104 = arith.mulf %103, %97 : vector<1x128xf32>
    %105 = arith.addf %73, %104 : vector<1x128xf32>
    %c2_56 = arith.constant 2 : index
    %c2_57 = arith.constant 2 : index
    %106 = memref.load %arg4[%c2_56, %c2_57] : memref<3x8xf32, #tpu.memory_space<smem>>
    %107 = vector.broadcast %106 : f32 to vector<1x128xf32>
    %108 = arith.mulf %107, %97 : vector<1x128xf32>
    %109 = arith.addf %77, %108 : vector<1x128xf32>
    %c3_58 = arith.constant 3 : index
    %110 = memref.load %arg3[%c3_58] : memref<8xf32, #tpu.memory_space<smem>>
    %111 = vector.broadcast %110 : f32 to vector<1x128xf32>
    %c3_59 = arith.constant 3 : index
    %c0_60 = arith.constant 0 : index
    %112 = memref.load %arg2[%c3_59, %c0_60] : memref<8x4xf32, #tpu.memory_space<smem>>
    %113 = vector.broadcast %112 : f32 to vector<1x128xf32>
    %114 = arith.mulf %113, %1 : vector<1x128xf32>
    %115 = arith.addf %111, %114 : vector<1x128xf32>
    %c3_61 = arith.constant 3 : index
    %c1_62 = arith.constant 1 : index
    %116 = memref.load %arg2[%c3_61, %c1_62] : memref<8x4xf32, #tpu.memory_space<smem>>
    %117 = vector.broadcast %116 : f32 to vector<1x128xf32>
    %118 = arith.mulf %117, %3 : vector<1x128xf32>
    %119 = arith.addf %115, %118 : vector<1x128xf32>
    %c3_63 = arith.constant 3 : index
    %c2_64 = arith.constant 2 : index
    %120 = memref.load %arg2[%c3_63, %c2_64] : memref<8x4xf32, #tpu.memory_space<smem>>
    %121 = vector.broadcast %120 : f32 to vector<1x128xf32>
    %122 = arith.mulf %121, %5 : vector<1x128xf32>
    %123 = arith.addf %119, %122 : vector<1x128xf32>
    %c3_65 = arith.constant 3 : index
    %c3_66 = arith.constant 3 : index
    %124 = memref.load %arg2[%c3_65, %c3_66] : memref<8x4xf32, #tpu.memory_space<smem>>
    %125 = vector.broadcast %124 : f32 to vector<1x128xf32>
    %126 = arith.mulf %125, %7 : vector<1x128xf32>
    %127 = arith.addf %123, %126 : vector<1x128xf32>
    %cst_67 = arith.constant 0.000000e+00 : f32
    %128 = vector.broadcast %cst_67 : f32 to vector<1x128xf32>
    %129 = arith.maximumf %127, %128 : vector<1x128xf32>
    %c0_68 = arith.constant 0 : index
    %c3_69 = arith.constant 3 : index
    %130 = memref.load %arg4[%c0_68, %c3_69] : memref<3x8xf32, #tpu.memory_space<smem>>
    %131 = vector.broadcast %130 : f32 to vector<1x128xf32>
    %132 = arith.mulf %131, %129 : vector<1x128xf32>
    %133 = arith.addf %101, %132 : vector<1x128xf32>
    %c1_70 = arith.constant 1 : index
    %c3_71 = arith.constant 3 : index
    %134 = memref.load %arg4[%c1_70, %c3_71] : memref<3x8xf32, #tpu.memory_space<smem>>
    %135 = vector.broadcast %134 : f32 to vector<1x128xf32>
    %136 = arith.mulf %135, %129 : vector<1x128xf32>
    %137 = arith.addf %105, %136 : vector<1x128xf32>
    %c2_72 = arith.constant 2 : index
    %c3_73 = arith.constant 3 : index
    %138 = memref.load %arg4[%c2_72, %c3_73] : memref<3x8xf32, #tpu.memory_space<smem>>
    %139 = vector.broadcast %138 : f32 to vector<1x128xf32>
    %140 = arith.mulf %139, %129 : vector<1x128xf32>
    %141 = arith.addf %109, %140 : vector<1x128xf32>
    %c4 = arith.constant 4 : index
    %142 = memref.load %arg3[%c4] : memref<8xf32, #tpu.memory_space<smem>>
    %143 = vector.broadcast %142 : f32 to vector<1x128xf32>
    %c4_74 = arith.constant 4 : index
    %c0_75 = arith.constant 0 : index
    %144 = memref.load %arg2[%c4_74, %c0_75] : memref<8x4xf32, #tpu.memory_space<smem>>
    %145 = vector.broadcast %144 : f32 to vector<1x128xf32>
    %146 = arith.mulf %145, %1 : vector<1x128xf32>
    %147 = arith.addf %143, %146 : vector<1x128xf32>
    %c4_76 = arith.constant 4 : index
    %c1_77 = arith.constant 1 : index
    %148 = memref.load %arg2[%c4_76, %c1_77] : memref<8x4xf32, #tpu.memory_space<smem>>
    %149 = vector.broadcast %148 : f32 to vector<1x128xf32>
    %150 = arith.mulf %149, %3 : vector<1x128xf32>
    %151 = arith.addf %147, %150 : vector<1x128xf32>
    %c4_78 = arith.constant 4 : index
    %c2_79 = arith.constant 2 : index
    %152 = memref.load %arg2[%c4_78, %c2_79] : memref<8x4xf32, #tpu.memory_space<smem>>
    %153 = vector.broadcast %152 : f32 to vector<1x128xf32>
    %154 = arith.mulf %153, %5 : vector<1x128xf32>
    %155 = arith.addf %151, %154 : vector<1x128xf32>
    %c4_80 = arith.constant 4 : index
    %c3_81 = arith.constant 3 : index
    %156 = memref.load %arg2[%c4_80, %c3_81] : memref<8x4xf32, #tpu.memory_space<smem>>
    %157 = vector.broadcast %156 : f32 to vector<1x128xf32>
    %158 = arith.mulf %157, %7 : vector<1x128xf32>
    %159 = arith.addf %155, %158 : vector<1x128xf32>
    %cst_82 = arith.constant 0.000000e+00 : f32
    %160 = vector.broadcast %cst_82 : f32 to vector<1x128xf32>
    %161 = arith.maximumf %159, %160 : vector<1x128xf32>
    %c0_83 = arith.constant 0 : index
    %c4_84 = arith.constant 4 : index
    %162 = memref.load %arg4[%c0_83, %c4_84] : memref<3x8xf32, #tpu.memory_space<smem>>
    %163 = vector.broadcast %162 : f32 to vector<1x128xf32>
    %164 = arith.mulf %163, %161 : vector<1x128xf32>
    %165 = arith.addf %133, %164 : vector<1x128xf32>
    %c1_85 = arith.constant 1 : index
    %c4_86 = arith.constant 4 : index
    %166 = memref.load %arg4[%c1_85, %c4_86] : memref<3x8xf32, #tpu.memory_space<smem>>
    %167 = vector.broadcast %166 : f32 to vector<1x128xf32>
    %168 = arith.mulf %167, %161 : vector<1x128xf32>
    %169 = arith.addf %137, %168 : vector<1x128xf32>
    %c2_87 = arith.constant 2 : index
    %c4_88 = arith.constant 4 : index
    %170 = memref.load %arg4[%c2_87, %c4_88] : memref<3x8xf32, #tpu.memory_space<smem>>
    %171 = vector.broadcast %170 : f32 to vector<1x128xf32>
    %172 = arith.mulf %171, %161 : vector<1x128xf32>
    %173 = arith.addf %141, %172 : vector<1x128xf32>
    %c5 = arith.constant 5 : index
    %174 = memref.load %arg3[%c5] : memref<8xf32, #tpu.memory_space<smem>>
    %175 = vector.broadcast %174 : f32 to vector<1x128xf32>
    %c5_89 = arith.constant 5 : index
    %c0_90 = arith.constant 0 : index
    %176 = memref.load %arg2[%c5_89, %c0_90] : memref<8x4xf32, #tpu.memory_space<smem>>
    %177 = vector.broadcast %176 : f32 to vector<1x128xf32>
    %178 = arith.mulf %177, %1 : vector<1x128xf32>
    %179 = arith.addf %175, %178 : vector<1x128xf32>
    %c5_91 = arith.constant 5 : index
    %c1_92 = arith.constant 1 : index
    %180 = memref.load %arg2[%c5_91, %c1_92] : memref<8x4xf32, #tpu.memory_space<smem>>
    %181 = vector.broadcast %180 : f32 to vector<1x128xf32>
    %182 = arith.mulf %181, %3 : vector<1x128xf32>
    %183 = arith.addf %179, %182 : vector<1x128xf32>
    %c5_93 = arith.constant 5 : index
    %c2_94 = arith.constant 2 : index
    %184 = memref.load %arg2[%c5_93, %c2_94] : memref<8x4xf32, #tpu.memory_space<smem>>
    %185 = vector.broadcast %184 : f32 to vector<1x128xf32>
    %186 = arith.mulf %185, %5 : vector<1x128xf32>
    %187 = arith.addf %183, %186 : vector<1x128xf32>
    %c5_95 = arith.constant 5 : index
    %c3_96 = arith.constant 3 : index
    %188 = memref.load %arg2[%c5_95, %c3_96] : memref<8x4xf32, #tpu.memory_space<smem>>
    %189 = vector.broadcast %188 : f32 to vector<1x128xf32>
    %190 = arith.mulf %189, %7 : vector<1x128xf32>
    %191 = arith.addf %187, %190 : vector<1x128xf32>
    %cst_97 = arith.constant 0.000000e+00 : f32
    %192 = vector.broadcast %cst_97 : f32 to vector<1x128xf32>
    %193 = arith.maximumf %191, %192 : vector<1x128xf32>
    %c0_98 = arith.constant 0 : index
    %c5_99 = arith.constant 5 : index
    %194 = memref.load %arg4[%c0_98, %c5_99] : memref<3x8xf32, #tpu.memory_space<smem>>
    %195 = vector.broadcast %194 : f32 to vector<1x128xf32>
    %196 = arith.mulf %195, %193 : vector<1x128xf32>
    %197 = arith.addf %165, %196 : vector<1x128xf32>
    %c1_100 = arith.constant 1 : index
    %c5_101 = arith.constant 5 : index
    %198 = memref.load %arg4[%c1_100, %c5_101] : memref<3x8xf32, #tpu.memory_space<smem>>
    %199 = vector.broadcast %198 : f32 to vector<1x128xf32>
    %200 = arith.mulf %199, %193 : vector<1x128xf32>
    %201 = arith.addf %169, %200 : vector<1x128xf32>
    %c2_102 = arith.constant 2 : index
    %c5_103 = arith.constant 5 : index
    %202 = memref.load %arg4[%c2_102, %c5_103] : memref<3x8xf32, #tpu.memory_space<smem>>
    %203 = vector.broadcast %202 : f32 to vector<1x128xf32>
    %204 = arith.mulf %203, %193 : vector<1x128xf32>
    %205 = arith.addf %173, %204 : vector<1x128xf32>
    %c6 = arith.constant 6 : index
    %206 = memref.load %arg3[%c6] : memref<8xf32, #tpu.memory_space<smem>>
    %207 = vector.broadcast %206 : f32 to vector<1x128xf32>
    %c6_104 = arith.constant 6 : index
    %c0_105 = arith.constant 0 : index
    %208 = memref.load %arg2[%c6_104, %c0_105] : memref<8x4xf32, #tpu.memory_space<smem>>
    %209 = vector.broadcast %208 : f32 to vector<1x128xf32>
    %210 = arith.mulf %209, %1 : vector<1x128xf32>
    %211 = arith.addf %207, %210 : vector<1x128xf32>
    %c6_106 = arith.constant 6 : index
    %c1_107 = arith.constant 1 : index
    %212 = memref.load %arg2[%c6_106, %c1_107] : memref<8x4xf32, #tpu.memory_space<smem>>
    %213 = vector.broadcast %212 : f32 to vector<1x128xf32>
    %214 = arith.mulf %213, %3 : vector<1x128xf32>
    %215 = arith.addf %211, %214 : vector<1x128xf32>
    %c6_108 = arith.constant 6 : index
    %c2_109 = arith.constant 2 : index
    %216 = memref.load %arg2[%c6_108, %c2_109] : memref<8x4xf32, #tpu.memory_space<smem>>
    %217 = vector.broadcast %216 : f32 to vector<1x128xf32>
    %218 = arith.mulf %217, %5 : vector<1x128xf32>
    %219 = arith.addf %215, %218 : vector<1x128xf32>
    %c6_110 = arith.constant 6 : index
    %c3_111 = arith.constant 3 : index
    %220 = memref.load %arg2[%c6_110, %c3_111] : memref<8x4xf32, #tpu.memory_space<smem>>
    %221 = vector.broadcast %220 : f32 to vector<1x128xf32>
    %222 = arith.mulf %221, %7 : vector<1x128xf32>
    %223 = arith.addf %219, %222 : vector<1x128xf32>
    %cst_112 = arith.constant 0.000000e+00 : f32
    %224 = vector.broadcast %cst_112 : f32 to vector<1x128xf32>
    %225 = arith.maximumf %223, %224 : vector<1x128xf32>
    %c0_113 = arith.constant 0 : index
    %c6_114 = arith.constant 6 : index
    %226 = memref.load %arg4[%c0_113, %c6_114] : memref<3x8xf32, #tpu.memory_space<smem>>
    %227 = vector.broadcast %226 : f32 to vector<1x128xf32>
    %228 = arith.mulf %227, %225 : vector<1x128xf32>
    %229 = arith.addf %197, %228 : vector<1x128xf32>
    %c1_115 = arith.constant 1 : index
    %c6_116 = arith.constant 6 : index
    %230 = memref.load %arg4[%c1_115, %c6_116] : memref<3x8xf32, #tpu.memory_space<smem>>
    %231 = vector.broadcast %230 : f32 to vector<1x128xf32>
    %232 = arith.mulf %231, %225 : vector<1x128xf32>
    %233 = arith.addf %201, %232 : vector<1x128xf32>
    %c2_117 = arith.constant 2 : index
    %c6_118 = arith.constant 6 : index
    %234 = memref.load %arg4[%c2_117, %c6_118] : memref<3x8xf32, #tpu.memory_space<smem>>
    %235 = vector.broadcast %234 : f32 to vector<1x128xf32>
    %236 = arith.mulf %235, %225 : vector<1x128xf32>
    %237 = arith.addf %205, %236 : vector<1x128xf32>
    %c7 = arith.constant 7 : index
    %238 = memref.load %arg3[%c7] : memref<8xf32, #tpu.memory_space<smem>>
    %239 = vector.broadcast %238 : f32 to vector<1x128xf32>
    %c7_119 = arith.constant 7 : index
    %c0_120 = arith.constant 0 : index
    %240 = memref.load %arg2[%c7_119, %c0_120] : memref<8x4xf32, #tpu.memory_space<smem>>
    %241 = vector.broadcast %240 : f32 to vector<1x128xf32>
    %242 = arith.mulf %241, %1 : vector<1x128xf32>
    %243 = arith.addf %239, %242 : vector<1x128xf32>
    %c7_121 = arith.constant 7 : index
    %c1_122 = arith.constant 1 : index
    %244 = memref.load %arg2[%c7_121, %c1_122] : memref<8x4xf32, #tpu.memory_space<smem>>
    %245 = vector.broadcast %244 : f32 to vector<1x128xf32>
    %246 = arith.mulf %245, %3 : vector<1x128xf32>
    %247 = arith.addf %243, %246 : vector<1x128xf32>
    %c7_123 = arith.constant 7 : index
    %c2_124 = arith.constant 2 : index
    %248 = memref.load %arg2[%c7_123, %c2_124] : memref<8x4xf32, #tpu.memory_space<smem>>
    %249 = vector.broadcast %248 : f32 to vector<1x128xf32>
    %250 = arith.mulf %249, %5 : vector<1x128xf32>
    %251 = arith.addf %247, %250 : vector<1x128xf32>
    %c7_125 = arith.constant 7 : index
    %c3_126 = arith.constant 3 : index
    %252 = memref.load %arg2[%c7_125, %c3_126] : memref<8x4xf32, #tpu.memory_space<smem>>
    %253 = vector.broadcast %252 : f32 to vector<1x128xf32>
    %254 = arith.mulf %253, %7 : vector<1x128xf32>
    %255 = arith.addf %251, %254 : vector<1x128xf32>
    %cst_127 = arith.constant 0.000000e+00 : f32
    %256 = vector.broadcast %cst_127 : f32 to vector<1x128xf32>
    %257 = arith.maximumf %255, %256 : vector<1x128xf32>
    %c0_128 = arith.constant 0 : index
    %c7_129 = arith.constant 7 : index
    %258 = memref.load %arg4[%c0_128, %c7_129] : memref<3x8xf32, #tpu.memory_space<smem>>
    %259 = vector.broadcast %258 : f32 to vector<1x128xf32>
    %260 = arith.mulf %259, %257 : vector<1x128xf32>
    %261 = arith.addf %229, %260 : vector<1x128xf32>
    %c1_130 = arith.constant 1 : index
    %c7_131 = arith.constant 7 : index
    %262 = memref.load %arg4[%c1_130, %c7_131] : memref<3x8xf32, #tpu.memory_space<smem>>
    %263 = vector.broadcast %262 : f32 to vector<1x128xf32>
    %264 = arith.mulf %263, %257 : vector<1x128xf32>
    %265 = arith.addf %233, %264 : vector<1x128xf32>
    %c2_132 = arith.constant 2 : index
    %c7_133 = arith.constant 7 : index
    %266 = memref.load %arg4[%c2_132, %c7_133] : memref<3x8xf32, #tpu.memory_space<smem>>
    %267 = vector.broadcast %266 : f32 to vector<1x128xf32>
    %268 = arith.mulf %267, %257 : vector<1x128xf32>
    %269 = arith.addf %237, %268 : vector<1x128xf32>
    %270 = arith.maximumf %265, %269 : vector<1x128xf32>
    %271 = arith.maximumf %261, %270 : vector<1x128xf32>
    %272 = arith.subf %261, %271 : vector<1x128xf32>
    %273 = math.exp %272 : vector<1x128xf32>
    %274 = arith.subf %265, %271 : vector<1x128xf32>
    %275 = math.exp %274 : vector<1x128xf32>
    %276 = arith.subf %269, %271 : vector<1x128xf32>
    %277 = math.exp %276 : vector<1x128xf32>
    %278 = arith.addf %273, %275 : vector<1x128xf32>
    %279 = arith.addf %278, %277 : vector<1x128xf32>
    %280 = tpu.reciprocal %279 {approx = true} : vector<1x128xf32> -> vector<1x128xf32>
    %281 = arith.mulf %273, %280 : vector<1x128xf32>
    %c0_134 = arith.constant 0 : index
    %c0_135 = arith.constant 0 : index
    %c0_136 = arith.constant 0 : index
    %282 = vector.load %arg6[%c0_134, %c0_135, %c0_136] : memref<3x1x128xf32, #tpu.memory_space<vmem>>, vector<1x1x128xf32>
    %283 = vector.shape_cast %282 : vector<1x1x128xf32> to vector<1x128xf32>
    %284 = vector.shape_cast %281 : vector<1x128xf32> to vector<1x1x128xf32>
    tpu.vector_store %arg6[%c0_134, %c0_135, %c0_136], %284 {strides = array<i32>} : memref<3x1x128xf32, #tpu.memory_space<vmem>>, vector<1x1x128xf32>,
    %285 = arith.mulf %275, %280 : vector<1x128xf32>
    %c1_137 = arith.constant 1 : index
    %c0_138 = arith.constant 0 : index
    %c0_139 = arith.constant 0 : index
    %286 = vector.load %arg6[%c1_137, %c0_138, %c0_139] : memref<3x1x128xf32, #tpu.memory_space<vmem>>, vector<1x1x128xf32>
    %287 = vector.shape_cast %286 : vector<1x1x128xf32> to vector<1x128xf32>
    %288 = vector.shape_cast %285 : vector<1x128xf32> to vector<1x1x128xf32>
    tpu.vector_store %arg6[%c1_137, %c0_138, %c0_139], %288 {strides = array<i32>} : memref<3x1x128xf32, #tpu.memory_space<vmem>>, vector<1x1x128xf32>,
    %289 = arith.mulf %277, %280 : vector<1x128xf32>
    %c2_140 = arith.constant 2 : index
    %c0_141 = arith.constant 0 : index
    %c0_142 = arith.constant 0 : index
    %290 = vector.load %arg6[%c2_140, %c0_141, %c0_142] : memref<3x1x128xf32, #tpu.memory_space<vmem>>, vector<1x1x128xf32>
    %291 = vector.shape_cast %290 : vector<1x1x128xf32> to vector<1x128xf32>
    %292 = vector.shape_cast %289 : vector<1x128xf32> to vector<1x1x128xf32>
    tpu.vector_store %arg6[%c2_140, %c0_141, %c0_142], %292 {strides = array<i32>} : memref<3x1x128xf32, #tpu.memory_space<vmem>>, vector<1x1x128xf32>,
    return
  }
  func.func @transform_0(%arg0: i32) -> (i32, i32, i32) {
    %c0_i32 = arith.constant 0 : i32
    %c0_i32_0 = arith.constant 0 : i32
    %c0_i32_1 = arith.constant 0 : i32
    return %c0_i32, %arg0, %c0_i32_0 : i32, i32, i32
  }
  func.func @transform_1(%arg0: i32) -> (i32, i32) {
    %c0_i32 = arith.constant 0 : i32
    %c0_i32_0 = arith.constant 0 : i32
    %c0_i32_1 = arith.constant 0 : i32
    return %c0_i32, %c0_i32_0 : i32, i32
  }
  func.func @transform_2(%arg0: i32) -> i32 {
    %c0_i32 = arith.constant 0 : i32
    %c0_i32_0 = arith.constant 0 : i32
    return %c0_i32 : i32
  }
  func.func @transform_3(%arg0: i32) -> (i32, i32) {
    %c0_i32 = arith.constant 0 : i32
    %c0_i32_0 = arith.constant 0 : i32
    %c0_i32_1 = arith.constant 0 : i32
    return %c0_i32, %c0_i32_0 : i32, i32
  }
  func.func @transform_4(%arg0: i32) -> i32 {
    %c0_i32 = arith.constant 0 : i32
    %c0_i32_0 = arith.constant 0 : i32
    return %c0_i32 : i32
  }
  func.func @transform_5(%arg0: i32) -> (i32, i32, i32) {
    %c0_i32 = arith.constant 0 : i32
    %c0_i32_0 = arith.constant 0 : i32
    %c0_i32_1 = arith.constant 0 : i32
    return %c0_i32, %arg0, %c0_i32_0 : i32, i32, i32
  }
}

</mosaic_0001>

<bundles_post_ra>
// kernel: tpu_custom_call.1
= control target key start
LH: loop header
LB: loop body
LE: loop exit
PB: predicated region body
PF: predicated region fallthrough
CT: control target
= control target key end

     0   :  { %10 = vsyncpa [#allocation4], 0  ;;  %s824_s0 = inlined_call_operand.vmem [shape: f32[4,1,128], index: 0, kind: input, shape index: {}]   ;;  %s825_s1 = inlined_call_operand.vmem [shape: f32[8,4], index: 1, kind: input, shape index: {}]   ;;  %s826_s2 = inlined_call_operand.vmem [shape: f32[8], index: 2, kind: input, shape index: {}]   ;;  %s827_s3 = inlined_call_operand.vmem [shape: f32[3,8], index: 3, kind: input, shape index: {}]   ;;  %s828_s4 = inlined_call_operand.vmem [shape: f32[3], index: 4, kind: input, shape index: {}]   ;;  %s829_s5 = inlined_call_operand.hbm [shape: f32[3,1,128], index: 5, kind: output, shape index: {}]  }
   0x1   :  { %11 = vsyncpa [#allocation6], 0 }
   0x2   :  { %12 = vsyncpa [#allocation9], 0  ;;  %s32_s20 = sshll.u32 %s826_s2, 4  ;;  %s33_s20 = int_to_ptr.vmem [resolvable:$true] %s32_s20 }
   0x3   :  { %13 = vsyncpa [#allocation3], 0  ;;  %s22_s23 = sshll.u32 %s825_s1, 4  ;;  %s452_s24 = scalar_lea.vmem %s33_s20, 16  ;;  %s23_s23 = int_to_ptr.vmem [resolvable:$true] %s22_s23 }
   0x4   :  { %p453_p0 = scmp.ne.s32.totalorder %s33_s20, %s452_s24  ;;  %p457_p1 = scmp.lt.s32.totalorder %s33_s20, %s33_s20 }
   0x5   :  { %p458_p2 = scmp.lt.s32.totalorder %s452_s24, %s452_s24 }
   0x7   :  { %p459_p3 = por %p458_p2, %p457_p1 }
   0x9   :  { %p460_p4 = pnand %p459_p3, %p453_p0 }
   0xb   :  { %463 = shalt.err (!%p460_p4)
}
   0xc   :  { %s530_s25 = smov [#allocation5]   ;;  %s464_s26 = scalar_lea.vmem %s23_s23, 128 }
   0xd   :  { %35 = dma.vmem_to_smem %s33_s20, 16, %s530_s25, [#allocation6]  }
   0xe   :  { %p465_p5 = scmp.ne.s32.totalorder %s23_s23, %s464_s26  ;;  %p469_p6 = scmp.lt.s32.totalorder %s23_s23, %s23_s23 }
   0xf   :  { %p470_p7 = scmp.lt.s32.totalorder %s464_s26, %s464_s26 }
  0x11   :  { %p471_p8 = por %p470_p7, %p469_p6 }
  0x13   :  { %p472_p9 = pnand %p471_p8, %p465_p5 }
  0x15   :  { %475 = shalt.err (!%p472_p9)
}
  0x16   :  { %s531_s2 = smov [#allocation2]   ;;  %s42_s28 = sshll.u32 %s827_s3, 4  ;;  %s43_s28 = int_to_ptr.vmem [resolvable:$true] %s42_s28 }
  0x17   :  { %25 = dma.vmem_to_smem %s23_s23, 128, %s531_s2, [#allocation4]  }
  0x18   :  { %s52_s6 = sshll.u32 %s828_s4, 4  ;;  %s476_s7 = scalar_lea.vmem %s43_s28, 64  ;;  %s53_s6 = int_to_ptr.vmem [resolvable:$true] %s52_s6 }
  0x19   :  { %p477_p10 = scmp.ne.s32.totalorder %s43_s28, %s476_s7  ;;  %p481_p11 = scmp.lt.s32.totalorder %s43_s28, %s43_s28 }
  0x1a   :  { %p482_p12 = scmp.lt.s32.totalorder %s476_s7, %s476_s7 }
  0x1c   :  { %p483_p13 = por %p482_p12, %p481_p11 }
  0x1e   :  { %p484_p0 = pnand %p483_p13, %p477_p10 }
  0x20   :  { %487 = shalt.err (!%p484_p0)
}
  0x21   :  { %s532_s8 = smov [#allocation7]   ;;  %s488_s9 = scalar_lea.vmem %s53_s6, 16 }
  0x22   :  { %45 = dma.vmem_to_smem %s43_s28, 64, %s532_s8, [#allocation6]  }
  0x23   :  { %p489_p1 = scmp.ne.s32.totalorder %s53_s6, %s488_s9  ;;  %p493_p2 = scmp.lt.s32.totalorder %s53_s6, %s53_s6 }
  0x24   :  { %p494_p3 = scmp.lt.s32.totalorder %s488_s9, %s488_s9 }
  0x26   :  { %p495_p4 = por %p494_p3, %p493_p2 }
  0x28   :  { %p496_p5 = pnand %p495_p4, %p489_p1 }
  0x2a   :  { %499 = shalt.err (!%p496_p5)
}
  0x2b   :  { %s533_s3 = smov [#allocation8]  }
  0x2c   :  { %55 = dma.vmem_to_smem %s53_s6, 16, %s533_s3, [#allocation9]  }
  0x2d   :  { %522 = dma.done.wait [#allocation4], 128  }
  0x2e   :  { %523 = vsyncadd [#allocation4], 4294967168 }
  0x2f   :  { %524 = dma.done.wait [#allocation6], 80  }
  0x30   :  { %525 = vsyncadd [#allocation6], 4294967216 }
  0x31   :  { %526 = dma.done.wait [#allocation9], 16  }
  0x32   :  { %527 = vsyncadd [#allocation9], 4294967280 }
  0x33   :  { %68 = sfence }
  0x34   :  { %s579_s4 = sld [smem:[#allocation8]]  ;;  %s581_s10 = sld [smem:[#allocation8 + $0x1]]  ;;  %v596_v0 = vld [vmem:[%s824_s0] sm:$0x1]  ;;  %v605_v1 = vld [vmem:[%s824_s0 + $0x1] sm:$0x1] }
  0x35   :  { %s583_s11 = sld [smem:[#allocation8 + $0x2]]  ;;  %s585_s12 = sld [smem:[#allocation5]]  ;;  %v614_v2 = vld [vmem:[%s824_s0 + $0x2] sm:$0x1]  ;;  %v624_v6 = vld [vmem:[%s824_s0 + $0x3] sm:$0x1] }
  0x36   :  { %s84_s13 = sld [smem:[#allocation2]]  ;;  %s376_s14 = sld [smem:[#allocation2 + $0x1]] }
  0x37   :  { %s377_s15 = sld [smem:[#allocation2 + $0x2]]  ;;  %s587_s16 = sld [smem:[#allocation2 + $0x3]] }
  0x38   :  { %s589_s17 = sld [smem:[#allocation7]]  ;;  %s600_s22 = sld [smem:[#allocation5 + $0x1]] }
  0x39   :  { %s591_s18 = sld [smem:[#allocation7 + $0x80]]  ;;  %s383_s26 = sld [smem:[#allocation2 + $0x81]] }
  0x3a   :  { %s598_s21 = sld [smem:[#allocation7 + $0x100]]  ;;  %s607_s2 = sld [smem:[#allocation2 + $0x82]]  ;;  %v77_v11 = vstv %s579_s4  ;;  %v79_v12 = vstv %s581_s10 }
  0x3b   :  { %s382_s25 = sld [smem:[#allocation2 + $0x80]]  ;;  %s609_s1 = sld [smem:[#allocation2 + $0x83]]  ;;  %v83_v3 = vstv %s585_s12  ;;  %v81_v23 = vstv %s583_s11 }
  0x3c   :  { %v85_v4 = vstv %s84_s13  ;;  %v89_v5 = vstv %s376_s14  ;;  %s617_s29 = sld [smem:[#allocation7 + $0x1]]  ;;  %s631_s9 = sld [smem:[#allocation5 + $0x2]] }
  0x3d   :  { %s619_s30 = sld [smem:[#allocation7 + $0x81]]  ;;  %v86_v7 = vmul.f32 %v85_v4, %v596_v0  ;;  %v90_v8 = vmul.f32 %v605_v1, %v89_v5  ;;  %v93_v9 = vstv %s377_s15  ;;  %v97_v10 = vstv %s587_s16  ;;  %s633_s3 = sld [smem:[#allocation2 + $0x100]] }
  0x3e   :  { %s629_s8 = sld [smem:[#allocation7 + $0x101]]  ;;  %v94_v14 = vmul.f32 %v614_v2, %v93_v9  ;;  %s640_s0 = sld [smem:[#allocation2 + $0x102]]  ;;  %v98_v15 = vmul.f32 %v624_v6, %v97_v10  ;;  %v114_v16 = vstv %s600_s22  ;;  %v102_v24 = vstv %s589_s17 }
  0x3f   :  { %s635_s12 = sld [smem:[#allocation2 + $0x101]]  ;;  %v87_v13 = vadd.f32 %v86_v7, %v83_v3  ;;  %s642_s13 = sld [smem:[#allocation2 + $0x103]]  ;;  %v120_v18 = vstv %s383_s26  ;;  %v106_v25 = vstv %s591_s18 }
  0x40   :  { %v121_v21 = vmul.f32 %v605_v1, %v120_v18  ;;  %v124_v22 = vstv %s607_s2  ;;  %s649_s14 = sld [smem:[#allocation5 + $0x3]]  ;;  %s655_s15 = sld [smem:[#allocation2 + $0x180]]  ;;  %v110_v28 = vstv %s598_s21 }
  0x41   :  { %v116_v17 = vstv %s382_s25  ;;  %v91_v19 = vadd.f32 %v90_v8, %v87_v13  ;;  %v128_v26 = vstv %s609_s1  ;;  %s657_s16 = sld [smem:[#allocation2 + $0x181]]  ;;  %v125_v30 = vmul.f32 %v614_v2, %v124_v22  ;;  %s661_s19 = sld [smem:[#allocation2 + $0x182]] }
  0x42   :  { %v117_v20 = vmul.f32 %v116_v17, %v596_v0  ;;  %v133_v31 = vstv %s617_s29  ;;  %v145_v32 = vstv %s631_s9  ;;  %v129_v37 = vmul.f32 %v624_v6, %v128_v26  ;;  %s669_s11 = sld [smem:[#allocation2 + $0x183]]  ;;  %s675_s17 = sld [smem:[#allocation7 + $0x2]] }
  0x43   :  { %v95_v27 = vadd.f32 %v94_v14, %v91_v19  ;;  %v147_v33 = vstv %s633_s3  ;;  %v137_v39 = vstv %s619_s30  ;;  %s677_s18 = sld [smem:[#allocation7 + $0x82]]  ;;  %s682_s21 = sld [smem:[#allocation5 + $0x4]] }
  0x44   :  { %v118_v29 = vadd.f32 %v117_v20, %v114_v16  ;;  %v148_v38 = vmul.f32 %v147_v33, %v596_v0  ;;  %v155_v41 = vstv %s640_s0  ;;  %v141_v45 = vstv %s629_s8  ;;  %s680_s20 = sld [smem:[#allocation7 + $0x102]]  ;;  %s688_s22 = sld [smem:[#allocation2 + $0x200]] }
  0x45   :  { %v151_v34 = vstv %s635_s12  ;;  %v99_v35 = vadd.f32 %v98_v15, %v95_v27  ;;  %v159_v42 = vstv %s642_s13  ;;  %v156_v47 = vmul.f32 %v614_v2, %v155_v41  ;;  %s690_s23 = sld [smem:[#allocation2 + $0x201]]  ;;  %s692_s24 = sld [smem:[#allocation2 + $0x202]] }
  0x46   :  { %v122_v36 = vadd.f32 %v121_v21, %v118_v29  ;;  %v152_v40 = vmul.f32 %v605_v1, %v151_v34  ;;  %v149_v46 = vadd.f32 %v148_v38, %v145_v32  ;;  %v160_v48 = vmul.f32 %v624_v6, %v159_v42  ;;  %s694_s25 = sld [smem:[#allocation2 + $0x203]]  ;;  %s712_s4 = sld [smem:[#allocation7 + $0x4]] }
  0x47   :  { %v100_v43 = vmax.f32 %v99_v35, 0.0  ;;  %v176_v49 = vstv %s649_s14  ;;  %v178_v50 = vstv %s655_s15  ;;  %v182_v57 = vstv %s657_s16  ;;  %s703_s26 = sld [smem:[#allocation7 + $0x3]]  ;;  %s716_s10 = sld [smem:[#allocation5 + $0x5]] }
  0x48   :  { %v126_v44 = vadd.f32 %v125_v30, %v122_v36  ;;  %v153_v55 = vadd.f32 %v152_v40, %v149_v46  ;;  %v179_v56 = vmul.f32 %v178_v50, %v596_v0  ;;  %v186_v58 = vstv %s661_s19  ;;  %s705_s2 = sld [smem:[#allocation7 + $0x83]]  ;;  %s718_s27 = sld [smem:[#allocation2 + $0x280]] }
  0x49   :  { %v103_v51 = vmul.f32 %v102_v24, %v100_v43  ;;  %v107_v52 = vmul.f32 %v106_v25, %v100_v43  ;;  %v111_v53 = vmul.f32 %v110_v28, %v100_v43  ;;  %v183_v4 = vmul.f32 %v605_v1, %v182_v57  ;;  %s709_s1 = sld [smem:[#allocation7 + $0x103]]  ;;  %s722_s28 = sld [smem:[#allocation2 + $0x281]] }
  0x4a   :  { %v130_v54 = vadd.f32 %v129_v37, %v126_v44  ;;  %v157_v63 = vadd.f32 %v156_v47, %v153_v55  ;;  %v180_v3 = vadd.f32 %v179_v56, %v176_v49  ;;  %v187_v5 = vmul.f32 %v614_v2, %v186_v58  ;;  %s724_s29 = sld [smem:[#allocation2 + $0x282]]  ;;  %s727_s30 = sld [smem:[#allocation7 + $0x84]] }
  0x4b   :  { %v104_v59 = vadd.f32 %v103_v51, %v77_v11  ;;  %v108_v60 = vadd.f32 %v107_v52, %v79_v12  ;;  %v112_v61 = vadd.f32 %v111_v53, %v81_v23  ;;  %v190_v10 = vstv %s669_s11  ;;  %s729_s6 = sld [smem:[#allocation7 + $0x104]]  ;;  %s735_s7 = sld [smem:[#allocation2 + $0x283]] }
  0x4c   :  { %v131_v62 = vmax.f32 %v130_v54, 0.0  ;;  %v161_v11 = vadd.f32 %v160_v48, %v157_v63  ;;  %v164_v12 = vstv %s675_s17  ;;  %v184_v13 = vadd.f32 %v183_v4, %v180_v3  ;;  %s741_s8 = sld [smem:[#allocation5 + $0x6]]  ;;  %s743_s9 = sld [smem:[#allocation2 + $0x300]] }
  0x4d   :  { %v191_v14 = vmul.f32 %v624_v6, %v190_v10  ;;  %v168_v17 = vstv %s677_s18  ;;  %v172_v18 = vstv %s680_s20  ;;  %v207_v22 = vstv %s682_s21  ;;  %s747_s3 = sld [smem:[#allocation2 + $0x301]]  ;;  %s749_s12 = sld [smem:[#allocation2 + $0x302]] }
  0x4e   :  { %v134_v7 = vmul.f32 %v133_v31, %v131_v62  ;;  %v138_v8 = vmul.f32 %v137_v39, %v131_v62  ;;  %v142_v9 = vmul.f32 %v141_v45, %v131_v62  ;;  %v162_v20 = vmax.f32 %v161_v11, 0.0  ;;  %s752_s0 = sld [smem:[#allocation2 + $0x303]]  ;;  %s755_s13 = sld [smem:[#allocation7 + $0x5]] }
  0x4f   :  { %v188_v21 = vadd.f32 %v187_v5, %v184_v13  ;;  %v209_v23 = vstv %s688_s22  ;;  %v213_v24 = vstv %s690_s23  ;;  %v217_v25 = vstv %s692_s24  ;;  %s760_s14 = sld [smem:[#allocation7 + $0x85]]  ;;  %s770_s16 = sld [smem:[#allocation5 + $0x7]] }
  0x50   :  { %v135_v15 = vadd.f32 %v134_v7, %v104_v59  ;;  %v139_v16 = vadd.f32 %v138_v8, %v108_v60  ;;  %v143_v19 = vadd.f32 %v142_v9, %v112_v61  ;;  %v221_v26 = vstv %s694_s25  ;;  %s766_s15 = sld [smem:[#allocation7 + $0x105]]  ;;  %s772_s19 = sld [smem:[#allocation2 + $0x380]] }
  0x51   :  { %v165_v27 = vmul.f32 %v164_v12, %v162_v20  ;;  %v169_v28 = vmul.f32 %v168_v17, %v162_v20  ;;  %v173_v29 = vmul.f32 %v172_v18, %v162_v20  ;;  %v192_v30 = vadd.f32 %v191_v14, %v188_v21  ;;  %s775_s11 = sld [smem:[#allocation2 + $0x381]]  ;;  %s780_s17 = sld [smem:[#allocation2 + $0x382]] }
  0x52   :  { %v195_v31 = vstv %s703_s26  ;;  %v199_v32 = vstv %s705_s2  ;;  %v210_v33 = vmul.f32 %v209_v23, %v596_v0  ;;  %v214_v34 = vmul.f32 %v605_v1, %v213_v24  ;;  %s782_s18 = sld [smem:[#allocation2 + $0x383]]  ;;  %s789_s20 = sld [smem:[#allocation7 + $0x6]] }
  0x53   :  { %v193_v35 = vmax.f32 %v192_v30, 0.0  ;;  %v203_v36 = vstv %s709_s1  ;;  %v218_v37 = vmul.f32 %v614_v2, %v217_v25  ;;  %v166_v38 = vadd.f32 %v165_v27, %v135_v15  ;;  %s793_s21 = sld [smem:[#allocation7 + $0x86]]  ;;  %s434_s23 = sld [smem:[#allocation7 + $0x7]] }
  0x54   :  { %v170_v39 = vadd.f32 %v169_v28, %v139_v16  ;;  %v211_v40 = vadd.f32 %v210_v33, %v207_v22  ;;  %v222_v41 = vmul.f32 %v624_v6, %v221_v26  ;;  %v174_v42 = vadd.f32 %v173_v29, %v143_v19  ;;  %s795_s22 = sld [smem:[#allocation7 + $0x106]]  ;;  %s435_s24 = sld [smem:[#allocation7 + $0x87]] }
  0x55   :  { %v196_v43 = vmul.f32 %v195_v31, %v193_v35  ;;  %v200_v44 = vmul.f32 %v199_v32, %v193_v35  ;;  %v238_v45 = vstv %s716_s10  ;;  %v240_v47 = vstv %s718_s27  ;;  %s436_s25 = sld [smem:[#allocation7 + $0x107]]  ;;  %s534_s26 = smov [#allocation10]  }
  0x56   :  { %v215_v46 = vadd.f32 %v214_v34, %v211_v40  ;;  %v244_v48 = vstv %s722_s28  ;;  %v248_v49 = vstv %s724_s29  ;;  %v226_v50 = vstv %s712_s4  ;;  %s357_s2 = sshll.u32 %s534_s26, 4  ;;  %s358_s2 = int_to_ptr.vmem [resolvable:$true] %s357_s2 }
  0x57   :  { %v230_v51 = vstv %s727_s30  ;;  %v234_v52 = vstv %s729_s6  ;;  %v241_v53 = vmul.f32 %v240_v47, %v596_v0  ;;  %v204_v54 = vmul.f32 %v203_v36, %v193_v35  ;;  %s500_s1 = scalar_lea.vmem %s358_s2, 48  ;;  %s504_s4 = scalar_lea.vmem %s358_s2, 64 }
  0x58   :  { %v219_v55 = vadd.f32 %v218_v37, %v215_v46  ;;  %v245_v56 = vmul.f32 %v605_v1, %v244_v48  ;;  %v252_v57 = vstv %s735_s7  ;;  %v197_v58 = vadd.f32 %v196_v43, %v166_v38  ;;  %p501_p6 = scmp.ne.s32.totalorder %s358_s2, %s500_s1  ;;  %p505_p7 = scmp.lt.s32.totalorder %s358_s2, %s358_s2 }
  0x59   :  { %v201_v59 = vadd.f32 %v200_v44, %v170_v39  ;;  %v242_v60 = vadd.f32 %v241_v53, %v238_v45  ;;  %v249_v61 = vmul.f32 %v614_v2, %v248_v49  ;;  %v253_v63 = vmul.f32 %v624_v6, %v252_v57  ;;  %p506_p8 = scmp.lt.s32.totalorder %s504_s4, %s500_s1 }
  0x5a   :  { %v223_v62 = vadd.f32 %v222_v41, %v219_v55  ;;  %v269_v3 = vstv %s741_s8  ;;  %v271_v4 = vstv %s743_s9  ;;  %v275_v8 = vstv %s747_s3 }
  0x5b   :  { %v246_v5 = vadd.f32 %v245_v56, %v242_v60  ;;  %v272_v7 = vmul.f32 %v271_v4, %v596_v0  ;;  %v279_v9 = vstv %s749_s12  ;;  %v205_v10 = vadd.f32 %v204_v54, %v174_v42  ;;  %p507_p9 = por %p506_p8, %p505_p7 }
  0x5c   :  { %v224_v11 = vmax.f32 %v223_v62, 0.0  ;;  %v276_v12 = vmul.f32 %v605_v1, %v275_v8  ;;  %v283_v13 = vstv %s752_s0  ;;  %v257_v15 = vstv %s755_s13 }
  0x5d   :  { %v250_v14 = vadd.f32 %v249_v61, %v246_v5  ;;  %v273_v16 = vadd.f32 %v272_v7, %v269_v3  ;;  %v280_v17 = vmul.f32 %v614_v2, %v279_v9  ;;  %v261_v21 = vstv %s760_s14  ;;  %p508_p10 = pnand %p507_p9, %p501_p6 }
  0x5e   :  { %v227_v18 = vmul.f32 %v226_v50, %v224_v11  ;;  %v231_v19 = vmul.f32 %v230_v51, %v224_v11  ;;  %v235_v20 = vmul.f32 %v234_v52, %v224_v11  ;;  %v265_v23 = vstv %s766_s15 }
  0x5f   :  { %v254_v22 = vadd.f32 %v253_v63, %v250_v14  ;;  %v277_v24 = vadd.f32 %v276_v12, %v273_v16  ;;  %v284_v25 = vmul.f32 %v624_v6, %v283_v13  ;;  %v300_v28 = vstv %s770_s16 }
  0x60   :  { %v228_v26 = vadd.f32 %v227_v18, %v197_v58  ;;  %v232_v27 = vadd.f32 %v231_v19, %v201_v59  ;;  %v302_v29 = vstv %s772_s19  ;;  %v306_v33 = vstv %s775_s11 }
  0x61   :  { %v255_v30 = vmax.f32 %v254_v22, 0.0  ;;  %v281_v31 = vadd.f32 %v280_v17, %v277_v24  ;;  %v303_v32 = vmul.f32 %v302_v29, %v596_v0  ;;  %v236_v34 = vadd.f32 %v235_v20, %v205_v10 }
  0x62   :  { %v307_v35 = vmul.f32 %v605_v1, %v306_v33  ;;  %v310_v36 = vstv %s780_s17  ;;  %v314_v37 = vstv %s782_s18  ;;  %v288_v44 = vstv %s789_s20 }
  0x63   :  { %v258_v38 = vmul.f32 %v257_v15, %v255_v30  ;;  %v262_v39 = vmul.f32 %v261_v21, %v255_v30  ;;  %v266_v40 = vmul.f32 %v265_v23, %v255_v30  ;;  %v285_v41 = vadd.f32 %v284_v25, %v281_v31 }
  0x64   :  { %v304_v42 = vadd.f32 %v303_v32, %v300_v28  ;;  %v311_v43 = vmul.f32 %v614_v2, %v310_v36  ;;  %v292_v45 = vstv %s793_s21  ;;  %v296_v46 = vstv %s795_s22 }
  0x65   :  { %v286_v0 = vmax.f32 %v285_v41, 0.0  ;;  %v315_v48 = vmul.f32 %v624_v6, %v314_v37  ;;  %v259_v1 = vadd.f32 %v258_v38, %v228_v26  ;;  %v263_v49 = vadd.f32 %v262_v39, %v232_v27 }
  0x66   :  { %v308_v47 = vadd.f32 %v307_v35, %v304_v42  ;;  %v267_v50 = vadd.f32 %v266_v40, %v236_v34  ;;  %v319_v56 = vstv %s434_s23  ;;  %v323_v57 = vstv %s435_s24 }
  0x67   :  { %v289_v51 = vmul.f32 %v288_v44, %v286_v0  ;;  %v293_v52 = vmul.f32 %v292_v45, %v286_v0  ;;  %v297_v53 = vmul.f32 %v296_v46, %v286_v0  ;;  %v327_v58 = vstv %s436_s25 }
  0x68   :  { %v312_v54 = vadd.f32 %v311_v43, %v308_v47 }
  0x69   :  { %v290_v59 = vadd.f32 %v289_v51, %v259_v1  ;;  %v294_v2 = vadd.f32 %v293_v52, %v263_v49  ;;  %v298_v60 = vadd.f32 %v297_v53, %v267_v50 }
  0x6a   :  { %v316_v55 = vadd.f32 %v315_v48, %v312_v54 }
  0x6c   :  { %v317_v61 = vmax.f32 %v316_v55, 0.0 }
  0x6e   :  { %v320_v62 = vmul.f32 %v319_v56, %v317_v61  ;;  %v324_v63 = vmul.f32 %v323_v57, %v317_v61  ;;  %v328_v3 = vmul.f32 %v327_v58, %v317_v61 }
  0x70   :  { %v321_v4 = vadd.f32 %v320_v62, %v290_v59  ;;  %v325_v6 = vadd.f32 %v324_v63, %v294_v2  ;;  %v329_v5 = vadd.f32 %v328_v3, %v298_v60 }
  0x72   :  { %v330_v7 = vmax.f32 %v325_v6, %v329_v5 }
  0x74   :  { %v331_v8 = vmax.f32 %v321_v4, %v330_v7 }
  0x76   :  { %v332_v9 = vsub.f32 %v321_v4, %v331_v8  ;;  %v335_v10 = vsub.f32 %v325_v6, %v331_v8  ;;  %v338_v11 = vsub.f32 %v329_v5, %v331_v8 }
  0x78   :  { %v333_v12 = vmul.f32 1.442695, %v332_v9  ;;  %v336_v13 = vmul.f32 1.442695, %v335_v10  ;;  %v339_v14 = vmul.f32 1.442695, %v338_v11 }
  0x7a   :  { %444 = vpow2.f32 %v333_v12 }
  0x7b   :  { %446 = vpow2.f32 %v336_v13 }
  0x7c   :  { %448 = vpow2.f32 %v339_v14 }
  0x84   :  { %v445_v15 = vpop.eup %444 }
  0x85   :  { %v447_v16 = vpop.eup %446 }
  0x86   :  { %v449_v17 = vpop.eup %448  ;;  %v341_v18 = vadd.f32 %v447_v16, %v445_v15 }
  0x88   :  { %v342_v19 = vadd.f32 %v449_v17, %v341_v18 }
  0x8a   :  { %450 = vrcp.f32 %v342_v19 }
  0x94   :  { %v451_v20 = vpop.eup %450 }
  0x95   :  { %v344_v21 = vmul.f32 %v451_v20, %v445_v15  ;;  %v346_v22 = vmul.f32 %v451_v20, %v447_v16  ;;  %v349_v23 = vmul.f32 %v451_v20, %v449_v17 }
  0x97   :  { %345 = vst [vmem:[#allocation10] sm:$0x1] %v344_v21  ;;  %348 = vst [vmem:[#allocation10 + $0x1] sm:$0x1] %v346_v22 }
  0x98   :  { %351 = vst [vmem:[#allocation10 + $0x2] sm:$0x1] %v349_v23 }
  0x99   :  { %511 = shalt.err (!%p508_p10)
}
  0x9a   :  { %s512_s28 = scalar_lea.hbm %s829_s5, 48 }
  0x9b   :  { %p513_p11 = scmp.ne.s32.totalorder %s829_s5, %s512_s28  ;;  %p516_p12 = scmp.lt.u32.totalorder %s512_s28, %s829_s5 }
  0x9d   :  { %p518_p13 = pnand %p516_p12, %p513_p11 }
  0x9f   :  { %521 = shalt.err (!%p518_p13)
}
  0xa0   :  { %s535_s8 = smov 16   ;;  %s536_s9 = smov 1  }
  0xa1   :  { %363 = dma.vmem_to_hbm [thread:$0]  %s358_s2, 48, %s829_s5, [#allocation3], %s535_s8, %s535_s8, %s536_s9  }
  0xa2   :  { %528 = dma.done.wait [#allocation3], 48  }
  0xa3   :  { %529 = vsyncadd [#allocation3], 4294967248 }
  0xa4   :  { %367 = vsyncpa [#allocation3], 1 }
  0xa5   :  { %368 = vsyncpa [#allocation4], 1 }
  0xa6   :  { %369 = vsyncpa [#allocation6], 1 }
  0xa7   :  { %370 = vsyncpa [#allocation9], 1 }

</bundles_post_ra>
